<compile_context>
chip_gen: v7x
topology: tpu7x:2x2x1
jax: 0.10.0
libtpu: 0.0.40
codegen_flags: <defaults>
</compile_context>

<pallas_src>
import math
from functools import partial

import jax
import jax.numpy as jnp
from jax import lax
from jax.experimental import pallas as pl
from jax.experimental.pallas import tpu as pltpu


def _round_up(x, m):
    return ((x + m - 1) // m) * m


def _fullsum(x):
    """Reduce an N-D block to a scalar via well-supported reductions."""
    while x.ndim > 2:
        x = jnp.sum(x, axis=0)
    return jnp.sum(x)


def _dice_partial_kernel(pred_ref, tgt_ref, out_ref, *,
                         mask_tail, tail_axis, tail_grid_axis, valid_in_tail):
    """Per-grid-step partial sums of channel-0 data.

    Writes a (1, 128) block: lane 0 = sum(p*t), lanes 1.. = sum(p + t).
    """
    p = pred_ref[...].astype(jnp.float32)
    t = tgt_ref[...].astype(jnp.float32)

    lane = lax.broadcasted_iota(jnp.int32, (1, 128), 1)

    def emit(pp, tt):
        inter = _fullsum(pp * tt)      # sum(p*t)
        spt = _fullsum(pp + tt)        # sum(p) + sum(t)
        out_ref[...] = jnp.where(lane == 0, inter, spt)

    if mask_tail:
        g = pl.program_id(tail_grid_axis)
        is_tail = g == pl.num_programs(tail_grid_axis) - 1

        @pl.when(jnp.logical_not(is_tail))
        def _():
            emit(p, t)

        @pl.when(is_tail)
        def _():
            # Zero out padding / other-channel elements BEFORE any arithmetic
            # so garbage (possibly NaN) never propagates into the sums.
            idx = lax.broadcasted_iota(jnp.int32, p.shape, tail_axis)
            keep = idx < valid_in_tail
            emit(jnp.where(keep, p, 0.0), jnp.where(keep, t, 0.0))
    else:
        emit(p, t)


def dice_loss_v2(y_pred, y_true, smooth=1.0, block_bytes=4 * 1024 * 1024):
    """DiceLossV2: dice loss on channel 0 of (N, C, ...) y_pred / y_true."""
    assert y_pred.shape == y_true.shape
    shape = y_pred.shape
    assert len(shape) >= 2
    N, C = int(shape[0]), int(shape[1])
    F = int(math.prod(shape[2:]))  # flattened spatial size per channel
    itemsize = jnp.dtype(y_pred.dtype).itemsize
    sub = max(8, 32 // itemsize)   # native sublane tile: 8 (f32), 16 (bf16), 32 (i8)

    if F % 128 == 0 and F > 0:
        # ---- Path A: (N, C, R, 128) plane view, sublane+lane dense ----------
        R = F // 128
        yp = y_pred.reshape(N, C, R, 128)
        yt = y_true.reshape(N, C, R, 128)
        plane_vmem = _round_up(R, sub) * 128 * itemsize   # one channel-0 plane in VMEM

        if plane_vmem <= block_bytes:
            # Batch whole samples per block (divisor of N -> no batch tail).
            max_bn = max(1, min(N, block_bytes // plane_vmem))
            b_n = 1
            for d in range(max_bn, 0, -1):
                if N % d == 0:
                    b_n = d
                    break
            tile_r, num_r, mask_tail, valid_tail = R, 1, False, R
        else:
            # One plane does not fit: tile the row axis of a single sample.
            b_n = 1
            tile_r = max(sub, (block_bytes // (128 * itemsize)) // sub * sub)
            tile_r = min(tile_r, R)
            num_r = pl.cdiv(R, tile_r)
            mask_tail = (R % tile_r) != 0
            valid_tail = R - (num_r - 1) * tile_r

        grid = (N // b_n, num_r)
        num_steps = grid[0] * grid[1]
        in_specs = [
            pl.BlockSpec((b_n, 1, tile_r, 128), lambda nb, rb: (nb, 0, rb, 0)),
            pl.BlockSpec((b_n, 1, tile_r, 128), lambda nb, rb: (nb, 0, rb, 0)),
        ]
        out_spec = pl.BlockSpec((1, 128),
                                lambda nb, rb, _nr=num_r: (0, nb * _nr + rb))
        tail_axis, tail_grid_axis = 2, 1
        args = (yp, yt)
    else:
        # ---- Path B fallback: flattened (N, C*F) view, 128-multiple tiles ---
        CF = C * F
        yp = y_pred.reshape(N, CF)
        yt = y_true.reshape(N, CF)
        n_pad = _round_up(N, sub)                    # VMEM sublane padding of the block
        tile_f = max(128, (block_bytes // (n_pad * itemsize)) // 128 * 128)
        tile_f = min(tile_f, _round_up(F, 128))
        if tile_f > CF:                              # tiny arrays: full-dim block is legal
            tile_f = CF
        num_f = pl.cdiv(F, tile_f)
        mask_tail = (F % tile_f) != 0
        valid_tail = F - (num_f - 1) * tile_f

        grid = (num_f,)
        num_steps = num_f
        in_specs = [
            pl.BlockSpec((N, tile_f), lambda fb: (0, fb)),
            pl.BlockSpec((N, tile_f), lambda fb: (0, fb)),
        ]
        out_spec = pl.BlockSpec((1, 128), lambda fb: (0, fb))
        tail_axis, tail_grid_axis = 1, 0
        args = (yp, yt)

    kernel = partial(_dice_partial_kernel,
                     mask_tail=mask_tail,
                     tail_axis=tail_axis,
                     tail_grid_axis=tail_grid_axis,
                     valid_in_tail=int(valid_tail))

    cost = pl.CostEstimate(
        flops=4 * N * max(F, 1),
        transcendentals=0,
        bytes_accessed=2 * N * F * itemsize + num_steps * 128 * 4,
    )

    partials = pl.pallas_call(
        kernel,
        out_shape=jax.ShapeDtypeStruct((1, num_steps * 128), jnp.float32),
        grid=grid,
        in_specs=in_specs,
        out_specs=out_spec,
        compiler_params=pltpu.CompilerParams(
            dimension_semantics=("parallel",) * len(grid),
            vmem_limit_bytes=32 * 1024 * 1024,
        ),
        cost_estimate=cost,
    )(*args)

    # Tiny cross-block combine + dice formula (num_steps x 2 scalars) in XLA.
    parts = partials.reshape(num_steps, 128)
    inter = jnp.sum(parts[:, 0])
    spt = jnp.sum(parts[:, 1])
    dsc = (2.0 * inter + smooth) / (spt + smooth)
    return 1.0 - dsc


def _reference_dice_v2(y_pred, y_true, smooth=1.0):
    """Pure-JAX reference matching the PyTorch DiceLossV2 semantics."""
    p0 = y_pred[:, 0].reshape(-1).astype(jnp.float32)
    t0 = y_true[:, 0].reshape(-1).astype(jnp.float32)
    inter = jnp.sum(p0 * t0)
    dsc = (2.0 * inter + smooth) / (jnp.sum(p0) + jnp.sum(t0) + smooth)
    return 1.0 - dsc


if __name__ == "__main__":
    key = jax.random.PRNGKey(0)
    k1, k2, k3, k4 = jax.random.split(key, 4)

    # Main case (Path A: H*W multiple of 128).
    N, C, H, W = 2, 4, 16, 16
    y_pred = jax.random.normal(k1, (N, C, H, W), dtype=jnp.float32)
    y_true = jax.nn.softmax(
        jax.random.normal(k2, (N, C, H, W), dtype=jnp.float32), axis=1)
    loss = jax.block_until_ready(dice_loss_v2(y_pred, y_true))
    ref = jax.block_until_ready(_reference_dice_v2(y_pred, y_true))
    assert jnp.allclose(loss, ref, atol=1e-5, rtol=1e-5), (loss, ref)

    # Fallback case (Path B: H*W not a multiple of 128).
    yp2 = jax.random.normal(k3, (2, 3, 10, 10), dtype=jnp.float32)
    yt2 = jax.nn.softmax(
        jax.random.normal(k4, (2, 3, 10, 10), dtype=jnp.float32), axis=1)
    loss2 = jax.block_until_ready(dice_loss_v2(yp2, yt2))
    ref2 = jax.block_until_ready(_reference_dice_v2(yp2, yt2))
    assert jnp.allclose(loss2, ref2, atol=1e-5, rtol=1e-5), (loss2, ref2)

    print("KERNEL_OK")
</pallas_src>

<mosaic_0001>
module attributes {stable_mosaic.version = 11 : i64} {
  func.func @_dice_partial_kernel(%arg0: i32, %arg1: i32, %arg2: memref<2x1x2x128xf32, #tpu.memory_space<vmem>>, %arg3: memref<2x1x2x128xf32, #tpu.memory_space<vmem>>, %arg4: memref<1x128xf32, #tpu.memory_space<vmem>>) attributes {dimension_semantics = [#tpu.dimension_semantics<parallel>, #tpu.dimension_semantics<parallel>], iteration_bounds = array<i64: 1, 1>, scalar_prefetch = 0 : i64, scratch_operands = 0 : i64, tpu.core_type = #tpu.core_type<tc>, window_params = [{transform_indices = @transform_0, window_bounds = array<i64: 2, 1, 2, 128>}, {transform_indices = @transform_1, window_bounds = array<i64: 2, 1, 2, 128>}, {transform_indices = @transform_2, window_bounds = array<i64: 1, 128>}]} {
    %c0 = arith.constant 0 : index
    %c0_0 = arith.constant 0 : index
    %c0_1 = arith.constant 0 : index
    %c0_2 = arith.constant 0 : index
    %0 = vector.load %arg2[%c0, %c0_0, %c0_1, %c0_2] : memref<2x1x2x128xf32, #tpu.memory_space<vmem>>, vector<2x1x2x128xf32>
    %c0_3 = arith.constant 0 : index
    %c0_4 = arith.constant 0 : index
    %c0_5 = arith.constant 0 : index
    %c0_6 = arith.constant 0 : index
    %1 = vector.load %arg3[%c0_3, %c0_4, %c0_5, %c0_6] : memref<2x1x2x128xf32, #tpu.memory_space<vmem>>, vector<2x1x2x128xf32>
    %2 = tpu.iota {dimensions = array<i32: 1>} : vector<1x128xi32>
    %3 = arith.mulf %0, %1 : vector<2x1x2x128xf32>
    %cst = arith.constant dense<0.000000e+00> : vector<1x2x128xf32>
    %4 = vector.multi_reduction <add>, %3, %cst [0] : vector<2x1x2x128xf32> to vector<1x2x128xf32>
    %cst_7 = arith.constant dense<0.000000e+00> : vector<2x128xf32>
    %5 = vector.multi_reduction <add>, %4, %cst_7 [0] : vector<1x2x128xf32> to vector<2x128xf32>
    %6 = vector.shape_cast %5 : vector<2x128xf32> to vector<1x2x128xf32>
    %cst_8 = arith.constant dense<0.000000e+00> : vector<1xf32>
    %7 = vector.multi_reduction <add>, %6, %cst_8 [1, 2] : vector<1x2x128xf32> to vector<1xf32>
    %8 = vector.shape_cast %7 : vector<1xf32> to vector<1x1x1xf32>
    %9 = vector.extract %8[0, 0, 0] : f32 from vector<1x1x1xf32>
    %10 = arith.addf %0, %1 : vector<2x1x2x128xf32>
    %cst_9 = arith.constant dense<0.000000e+00> : vector<1x2x128xf32>
    %11 = vector.multi_reduction <add>, %10, %cst_9 [0] : vector<2x1x2x128xf32> to vector<1x2x128xf32>
    %cst_10 = arith.constant dense<0.000000e+00> : vector<2x128xf32>
    %12 = vector.multi_reduction <add>, %11, %cst_10 [0] : vector<1x2x128xf32> to vector<2x128xf32>
    %13 = vector.shape_cast %12 : vector<2x128xf32> to vector<1x2x128xf32>
    %cst_11 = arith.constant dense<0.000000e+00> : vector<1xf32>
    %14 = vector.multi_reduction <add>, %13, %cst_11 [1, 2] : vector<1x2x128xf32> to vector<1xf32>
    %15 = vector.shape_cast %14 : vector<1xf32> to vector<1x1x1xf32>
    %16 = vector.extract %15[0, 0, 0] : f32 from vector<1x1x1xf32>
    %c0_i32 = arith.constant 0 : i32
    %17 = vector.broadcast %c0_i32 : i32 to vector<1x128xi32>
    %18 = arith.cmpi eq, %2, %17 : vector<1x128xi32>
    %19 = vector.broadcast %9 : f32 to vector<1x128xf32>
    %20 = vector.broadcast %16 : f32 to vector<1x128xf32>
    %21 = arith.select %18, %19, %20 : vector<1x128xi1>, vector<1x128xf32>
    %c0_12 = arith.constant 0 : index
    %c0_13 = arith.constant 0 : index
    %22 = vector.load %arg4[%c0_12, %c0_13] : memref<1x128xf32, #tpu.memory_space<vmem>>, vector<1x128xf32>
    tpu.vector_store %arg4[%c0_12, %c0_13], %21 {strides = array<i32>} : memref<1x128xf32, #tpu.memory_space<vmem>>, vector<1x128xf32>,
    return
  }
  func.func @transform_0(%arg0: i32, %arg1: i32) -> (i32, i32, i32, i32) {
    %c0_i32 = arith.constant 0 : i32
    %c0_i32_0 = arith.constant 0 : i32
    %c0_i32_1 = arith.constant 0 : i32
    return %arg0, %c0_i32, %arg1, %c0_i32_0 : i32, i32, i32, i32
  }
  func.func @transform_1(%arg0: i32, %arg1: i32) -> (i32, i32, i32, i32) {
    %c0_i32 = arith.constant 0 : i32
    %c0_i32_0 = arith.constant 0 : i32
    %c0_i32_1 = arith.constant 0 : i32
    return %arg0, %c0_i32, %arg1, %c0_i32_0 : i32, i32, i32, i32
  }
  func.func @transform_2(%arg0: i32, %arg1: i32) -> (i32, i32) {
    %c1_i32 = arith.constant 1 : i32
    %0 = arith.muli %arg0, %c1_i32 : i32
    %1 = arith.addi %0, %arg1 : i32
    %c0_i32 = arith.constant 0 : i32
    %c0_i32_0 = arith.constant 0 : i32
    return %c0_i32, %1 : i32, i32
  }
}

</mosaic_0001>

<bundles_post_ra>
// kernel: tpu_custom_call.1
= control target key start
LH: loop header
LB: loop body
LE: loop exit
PB: predicated region body
PF: predicated region fallthrough
CT: control target
= control target key end

     0   :  { %7 = vsyncpa [#allocation3], 0  ;;  %s255_s0 = inlined_call_operand.hbm [shape: f32[2,4,2,128], index: 0, kind: input, shape index: {}]   ;;  %s256_s1 = inlined_call_operand.hbm [shape: f32[2,4,2,128], index: 1, kind: input, shape index: {}]   ;;  %s257_s2 = inlined_call_operand.hbm [shape: f32[1,128], index: 2, kind: output, shape index: {}]  }
   0x1   :  { %8 = vsyncpa [#allocation6], 0 }
   0x2   :  { %9 = vsyncpa [#allocation4], 0  ;;  %s186_s9 = smov [#allocation2]   ;;  %s114_s13 = scalar_lea.hbm %s255_s0, 64 }
   0x3   :  { %s15_s10 = sshll.u32 %s186_s9, 4  ;;  %p115_p0 = scmp.ne.s32.totalorder %s255_s0, %s114_s13  ;;  %s16_s10 = int_to_ptr.vmem [resolvable:$true] %s15_s10 }
   0x4   :  { %s116_s18 = scalar_lea.hbm %s255_s0, 256  ;;  %p118_p2 = scmp.lt.u32.totalorder %s114_s13, %s255_s0 }
   0x5   :  { %p117_p1 = scmp.lt.u32.totalorder %s116_s18, %s114_s13 }
   0x7   :  { %p119_p3 = por %p118_p2, %p117_p1 }
   0x9   :  { %p120_p4 = pnand %p119_p3, %p115_p0 }
   0xb   :  { %123 = shalt.err (!%p120_p4)
}
   0xc   :  { %s124_s21 = scalar_lea.vmem %s16_s10, 64  ;;  %p129_p6 = scmp.lt.s32.totalorder %s16_s10, %s16_s10 }
   0xd   :  { %p125_p5 = scmp.ne.s32.totalorder %s16_s10, %s124_s21  ;;  %p130_p7 = scmp.lt.s32.totalorder %s124_s21, %s124_s21 }
   0xf   :  { %p131_p8 = por %p130_p7, %p129_p6 }
  0x11   :  { %p132_p9 = pnand %p131_p8, %p125_p5 }
  0x13   :  { %135 = shalt.err (!%p132_p9)
}
  0x14   :  { %s187_s22 = smov 128   ;;  %s188_s23 = smov 32  }
  0x15   :  { %s189_s24 = smov 2   ;;  %s190_s27 = smov [#allocation5]  }
  0x16   :  { %21 = dma.hbm_to_vmem [thread:$0]  %s255_s0, 64, %s16_s10, [#allocation3], %s187_s22, %s188_s23, %s189_s24  }
  0x17   :  { %s27_s28 = sshll.u32 %s190_s27, 4  ;;  %s136_s3 = scalar_lea.hbm %s256_s1, 64  ;;  %s28_s28 = int_to_ptr.vmem [resolvable:$true] %s27_s28 }
  0x18   :  { %p137_p10 = scmp.ne.s32.totalorder %s256_s1, %s136_s3  ;;  %s138_s8 = scalar_lea.hbm %s256_s1, 256 }
  0x19   :  { %p139_p11 = scmp.lt.u32.totalorder %s138_s8, %s136_s3  ;;  %p140_p12 = scmp.lt.u32.totalorder %s136_s3, %s256_s1 }
  0x1b   :  { %p141_p13 = por %p140_p12, %p139_p11 }
  0x1d   :  { %p142_p0 = pnand %p141_p13, %p137_p10 }
  0x1f   :  { %145 = shalt.err (!%p142_p0)
}
  0x20   :  { %s146_s0 = scalar_lea.vmem %s28_s28, 64  ;;  %p151_p2 = scmp.lt.s32.totalorder %s28_s28, %s28_s28 }
  0x21   :  { %p147_p1 = scmp.ne.s32.totalorder %s28_s28, %s146_s0  ;;  %p152_p3 = scmp.lt.s32.totalorder %s146_s0, %s146_s0 }
  0x23   :  { %p153_p4 = por %p152_p3, %p151_p2 }
  0x25   :  { %p154_p5 = pnand %p153_p4, %p147_p1 }
  0x27   :  { %157 = shalt.err (!%p154_p5)
}
  0x28   :  { %33 = dma.hbm_to_vmem [thread:$0]  %s256_s1, 64, %s28_s28, [#allocation6], %s187_s22, %s188_s23, %s189_s24  }
  0x29   :  { %180 = dma.done.wait [#allocation3], 64  }
  0x2a   :  { %181 = vsyncadd [#allocation3], 4294967232 }
  0x2b   :  { %182 = dma.done.wait [#allocation6], 64  }
  0x2c   :  { %183 = vsyncadd [#allocation6], 4294967232  ;;  %vm49_vm0 = vcmask 1041408   ;;  %v41_v0 = vld [vmem:[#allocation2] sm:$0x3]  ;;  %v45_v30 = vlaneseq  ;;  %s191_s13 = smov [#allocation7]  }
  0x2d   :  { %v42_v1 = vld [vmem:[#allocation2 + $0x2] sm:$0x3]  ;;  %v43_v2 = vld [vmem:[#allocation5] sm:$0x3]  ;;  %v44_v3 = vld [vmem:[#allocation5 + $0x2] sm:$0x3] }
  0x2e   :  { %v47_v4 = vmul.f32 %v43_v2, %v41_v0  ;;  %v64_v5 = vadd.f32 %v43_v2, %v41_v0  ;;  %v48_v6 = vmul.f32 %v44_v3, %v42_v1  ;;  %v65_v7 = vadd.f32 %v44_v3, %v42_v1  ;;  %s94_s14 = sshll.u32 %s191_s13, 4  ;;  %s95_s14 = int_to_ptr.vmem [resolvable:$true] %s94_s14 }
  0x2f   :  { %v46_v31 = vand.u32 127, %v45_v30  ;;  %s158_s16 = scalar_lea.vmem %s95_s14, 16  ;;  %s162_s17 = scalar_lea.vmem %s95_s14, 32 }
  0x30   :  { %v50_v8 = vsel %vm49_vm0, %v47_v4, 0.0  ;;  %v66_v9 = vsel %vm49_vm0, %v64_v5, 0.0  ;;  %v51_v10 = vsel %vm49_vm0, %v48_v6, 0.0  ;;  %v67_v11 = vsel %vm49_vm0, %v65_v7, 0.0  ;;  %p159_p6 = scmp.ne.s32.totalorder %s95_s14, %s158_s16  ;;  %p163_p7 = scmp.lt.s32.totalorder %s95_s14, %s95_s14 }
  0x31   :  { %v52_v12 = vadd.f32 %v51_v10, %v50_v8  ;;  %v68_v13 = vadd.f32 %v67_v11, %v66_v9  ;;  %vm80_vm1 = vcmp.eq.s32.totalorder %v46_v31, 0  ;;  %p164_p8 = scmp.lt.s32.totalorder %s162_s17, %s158_s16 }
  0x33   :  { %v54_v14 = vsel %vm49_vm0, %v52_v12, 0.0  ;;  %v70_v15 = vsel %vm49_vm0, %v68_v13, 0.0  ;;  %p165_p9 = por %p164_p8, %p163_p7 }
  0x34   :  { %55 = vadd.xlane.f32.xlu0 %v54_v14 }
  0x35   :  { %p166_p10 = pnand %p165_p9, %p159_p6 }
  0x38   :  { %71 = vadd.xlane.f32.xlu0 %v70_v15 }
  0xc1   :  { %v56_v16 = vpop.xlane.xlu0 %55 }
  0xc2   :  { %v57_v17 = vrot.slane %v56_v16, 4 }
  0xc4   :  { %v58_v18 = vadd.f32 %v57_v17, %v56_v16 }
  0xc5   :  { %v72_v19 = vpop.xlane.xlu0 %71 }
  0xc6   :  { %v59_v20 = vrot.slane %v58_v18, 2  ;;  %v73_v21 = vrot.slane %v72_v19, 4 }
  0xc8   :  { %v74_v22 = vadd.f32 %v73_v21, %v72_v19  ;;  %v60_v23 = vadd.f32 %v59_v20, %v58_v18 }
  0xca   :  { %v75_v24 = vrot.slane %v74_v22, 2  ;;  %v61_v25 = vrot.slane %v60_v23, 1 }
  0xcc   :  { %v76_v26 = vadd.f32 %v75_v24, %v74_v22  ;;  %v62_v27 = vadd.f32 %v61_v25, %v60_v23 }
  0xce   :  { %104 = vpush %v62_v27  ;;  %v77_v28 = vrot.slane %v76_v26, 1 }
  0xd0   :  { %v78_v29 = vadd.f32 %v77_v28, %v76_v26 }
  0xd2   :  { %106 = vpush %v78_v29 }
  0xff   :  { %s105_s1 = spop %104 }
 0x100   :  { %v81_v32 = vstv %s105_s1 }
 0x103   :  { %s107_s15 = spop %106 }
 0x104   :  { %v82_v33 = vstv %s107_s15 }
 0x105   :  { %v83_v34 = vsel %vm80_vm1, %v81_v32, %v82_v33 }
 0x106   :  { %84 = vst [vmem:[#allocation7] sm:$0x1] %v83_v34 }
 0x107   :  { %169 = shalt.err (!%p166_p10)
}
 0x108   :  { %s170_s20 = scalar_lea.hbm %s257_s2, 16 }
 0x109   :  { %p171_p11 = scmp.ne.s32.totalorder %s257_s2, %s170_s20  ;;  %p174_p12 = scmp.lt.u32.totalorder %s170_s20, %s257_s2 }
 0x10b   :  { %p176_p13 = pnand %p174_p12, %p171_p11 }
 0x10d   :  { %179 = shalt.err (!%p176_p13)
}
 0x10e   :  { %97 = dma.vmem_to_hbm [thread:$0]  %s95_s14, 16, %s257_s2, [#allocation4]  }
 0x10f   :  { %184 = dma.done.wait [#allocation4], 16  }
 0x110   :  { %185 = vsyncadd [#allocation4], 4294967280 }
 0x111   :  { %101 = vsyncpa [#allocation3], 1 }
 0x112   :  { %102 = vsyncpa [#allocation6], 1 }
 0x113   :  { %103 = vsyncpa [#allocation4], 1 }

</bundles_post_ra>
